<compile_context>
chip_gen: v5e
topology: v5e:2x2
jax: 0.10.0
libtpu: 0.0.40
codegen_flags: <defaults>
</compile_context>

<pallas_src>
import jax
import jax.numpy as jnp
from jax.experimental import pallas as pl
from jax.experimental.pallas import tpu as pltpu

HIDDEN = 256            # fc1..fc5 output width (fixed by the PyTorch module)
N_HIDDEN_MM = 4         # fc2..fc5: four 256x256 layers
LANE = 128
TB_MAX = 2048           # max batch rows per grid step (review: ok on v5e/v6e/v7x)
SMALL_BATCH = 1024      # whole batch in one tile up to this many rows
VMEM_LIMIT_BYTES = 40 * 1024 * 1024  # > v5e 16 MiB scoped default, < v7x 64 MiB physical


def _round_up(n, m):
    return ((n + m - 1) // m) * m


def g_net_kernel(x_ref, w1_ref, b1_ref, wh_ref, bh_ref, w6_ref, b6_ref, o_ref):
    """One batch tile through all 6 linear layers (no activations, as in G_net).

    x_ref : (TB, IN_PAD)        bf16
    w1_ref: (IN_PAD, 256)       bf16    b1_ref: (1, 256)      f32
    wh_ref: (4, 256, 256)       bf16    bh_ref: (4, 1, 256)   f32
    w6_ref: (256, OUT_PAD)      bf16    b6_ref: (1, OUT_PAD)  f32
    o_ref : (TB, OUT_PAD)       f32
    """
    h = jnp.dot(x_ref[...], w1_ref[...],
                preferred_element_type=jnp.float32) + b1_ref[...]
    for l in range(N_HIDDEN_MM):  # static unroll over the stacked hidden layers
        h = jnp.dot(h.astype(jnp.bfloat16), wh_ref[l],
                    preferred_element_type=jnp.float32) + bh_ref[l]
    h = jnp.dot(h.astype(jnp.bfloat16), w6_ref[...],
                preferred_element_type=jnp.float32) + b6_ref[...]
    o_ref[...] = h.astype(o_ref.dtype)


def init_g_net_params(key, input_size, output_size, dtype=jnp.float32):
    """PyTorch nn.Linear default init: U(-1/sqrt(fan_in), 1/sqrt(fan_in)).

    Weights are returned already transposed to (in_features, out_features);
    biases are (1, out_features).
    """
    sizes = [(input_size, HIDDEN)] + [(HIDDEN, HIDDEN)] * N_HIDDEN_MM \
            + [(HIDDEN, output_size)]
    params = []
    for (fan_in, fan_out) in sizes:
        key, kw, kb = jax.random.split(key, 3)
        bound = 1.0 / jnp.sqrt(jnp.asarray(fan_in, dtype))
        w = jax.random.uniform(kw, (fan_in, fan_out), dtype, -bound, bound)
        b = jax.random.uniform(kb, (1, fan_out), dtype, -bound, bound)
        params.append((w, b))
    return params


def prepare_g_net_params(params):
    """One-time parameter prep (hoisted out of the forward pass).

    Casts weights to bf16 / biases to f32, zero-pads the first/last feature
    dims to 128 lanes, and stacks the four identical 256x256 hidden layers
    into single (4, 256, 256) / (4, 1, 256) operands.
    """
    (w1, b1) = params[0]
    hidden = params[1:1 + N_HIDDEN_MM]
    (w6, b6) = params[-1]
    in_features = w1.shape[0]
    out_features = w6.shape[1]
    in_pad = _round_up(in_features, LANE)
    out_pad = _round_up(out_features, LANE)

    w1p = jnp.zeros((in_pad, HIDDEN), jnp.bfloat16)
    w1p = w1p.at[:in_features, :].set(w1.astype(jnp.bfloat16))
    b1p = b1.astype(jnp.float32).reshape(1, HIDDEN)

    wh = jnp.stack([w.astype(jnp.bfloat16) for (w, _) in hidden])                    # (4,256,256)
    bh = jnp.stack([b.astype(jnp.float32).reshape(1, HIDDEN) for (_, b) in hidden])  # (4,1,256)

    w6p = jnp.zeros((HIDDEN, out_pad), jnp.bfloat16)
    w6p = w6p.at[:, :out_features].set(w6.astype(jnp.bfloat16))
    b6p = jnp.zeros((1, out_pad), jnp.float32)
    b6p = b6p.at[:, :out_features].set(b6.astype(jnp.float32).reshape(1, -1))

    return {
        "w1p": w1p, "b1p": b1p, "wh": wh, "bh": bh, "w6p": w6p, "b6p": b6p,
        "in_features": in_features, "out_features": out_features,
        "in_pad": in_pad, "out_pad": out_pad,
    }


def g_net_forward(x, prepped):
    """x: (batch, input_size) f32 -> (batch, output_size) f32."""
    batch, in_features = x.shape
    assert in_features == prepped["in_features"]
    in_pad = prepped["in_pad"]
    out_pad = prepped["out_pad"]
    out_features = prepped["out_features"]

    # Batch tiling: one whole-batch tile if small; otherwise >= 2 tiles so both
    # v7x TensorCores get work, with at most TB_MAX rows per tile.
    if batch <= SMALL_BATCH:
        tb = _round_up(max(batch, 16), 16)   # 16-row multiple: bf16 sublane packing
        b_pad = tb
    else:
        tb = min(TB_MAX, _round_up((batch + 1) // 2, 512))
        b_pad = _round_up(batch, tb)
    grid = (b_pad // tb,)

    # Fused pad+cast of x (single op, no zeros-then-set HBM round trip).
    # Pad columns multiply zeroed w1p rows; pad rows are sliced off below.
    xp = jnp.pad(x.astype(jnp.bfloat16),
                 ((0, b_pad - batch), (0, in_pad - in_features)))

    def resident(shape):
        # Constant index_map -> block stays VMEM-resident across the grid;
        # single buffer since its DMA only happens once.
        zero = (0,) * len(shape)
        return pl.BlockSpec(shape, lambda i, _z=zero: _z,
                            pipeline_mode=pl.Buffered(1))

    out = pl.pallas_call(
        g_net_kernel,
        out_shape=jax.ShapeDtypeStruct((b_pad, out_pad), jnp.float32),
        grid=grid,
        in_specs=[
            pl.BlockSpec((tb, in_pad), lambda i: (i, 0)),       # x tile (pipelined)
            resident((in_pad, HIDDEN)),                         # w1
            resident((1, HIDDEN)),                              # b1
            resident((N_HIDDEN_MM, HIDDEN, HIDDEN)),            # stacked w2..w5
            resident((N_HIDDEN_MM, 1, HIDDEN)),                 # stacked b2..b5
            resident((HIDDEN, out_pad)),                        # w6
            resident((1, out_pad)),                             # b6
        ],
        out_specs=pl.BlockSpec((tb, out_pad), lambda i: (i, 0)),
        compiler_params=pltpu.CompilerParams(
            dimension_semantics=("parallel",),        # v7x: shard batch tiles over 2 TCs
            vmem_limit_bytes=VMEM_LIMIT_BYTES,
        ),
    )(xp, prepped["w1p"], prepped["b1p"], prepped["wh"], prepped["bh"],
      prepped["w6p"], prepped["b6p"])

    return out[:batch, :out_features]


def g_net_reference(x, params):
    """Pure-JAX reference mirroring the kernel numerics (bf16 inputs, f32 acc)."""
    h = x.astype(jnp.float32)
    for (w, b) in params:
        h = jnp.dot(h.astype(jnp.bfloat16), w.astype(jnp.bfloat16),
                    preferred_element_type=jnp.float32) + b.astype(jnp.float32)
    return h


if __name__ == "__main__":
    key = jax.random.PRNGKey(0)
    key, kx = jax.random.split(key)

    batch, input_size, output_size = 8, 8, 8   # small joint-dim-like shapes
    x = jax.random.normal(kx, (batch, input_size), jnp.float32)
    params = init_g_net_params(key, input_size, output_size)
    prepped = prepare_g_net_params(params)     # one-time weight prep (hoisted)

    out = g_net_forward(x, prepped)
    out = jax.block_until_ready(out)

    ref = g_net_reference(x, params)
    assert out.shape == (batch, output_size)
    assert jnp.allclose(out, ref, atol=1e-2, rtol=1e-2), (
        float(jnp.max(jnp.abs(out - ref))))

    print("KERNEL_OK")
</pallas_src>

<mosaic_0001>
module attributes {stable_mosaic.version = 11 : i64} {
  func.func @g_net_kernel(%arg0: i32, %arg1: memref<16x128xbf16, #tpu.memory_space<vmem>>, %arg2: memref<128x256xbf16, #tpu.memory_space<vmem>>, %arg3: memref<1x256xf32, #tpu.memory_space<vmem>>, %arg4: memref<4x256x256xbf16, #tpu.memory_space<vmem>>, %arg5: memref<4x1x256xf32, #tpu.memory_space<vmem>>, %arg6: memref<256x128xbf16, #tpu.memory_space<vmem>>, %arg7: memref<1x128xf32, #tpu.memory_space<vmem>>, %arg8: memref<16x128xf32, #tpu.memory_space<vmem>>) attributes {dimension_semantics = [#tpu.dimension_semantics<parallel>], iteration_bounds = array<i64: 1>, scalar_prefetch = 0 : i64, scratch_operands = 0 : i64, tpu.core_type = #tpu.core_type<tc>, window_params = [{transform_indices = @transform_0, window_bounds = array<i64: 16, 128>}, {pipeline_mode = #tpu.pipeline_mode<synchronous>, transform_indices = @transform_1, window_bounds = array<i64: 128, 256>}, {pipeline_mode = #tpu.pipeline_mode<synchronous>, transform_indices = @transform_2, window_bounds = array<i64: 1, 256>}, {pipeline_mode = #tpu.pipeline_mode<synchronous>, transform_indices = @transform_3, window_bounds = array<i64: 4, 256, 256>}, {pipeline_mode = #tpu.pipeline_mode<synchronous>, transform_indices = @transform_4, window_bounds = array<i64: 4, 1, 256>}, {pipeline_mode = #tpu.pipeline_mode<synchronous>, transform_indices = @transform_5, window_bounds = array<i64: 256, 128>}, {pipeline_mode = #tpu.pipeline_mode<synchronous>, transform_indices = @transform_6, window_bounds = array<i64: 1, 128>}, {transform_indices = @transform_7, window_bounds = array<i64: 16, 128>}]} {
    %c0 = arith.constant 0 : index
    %c0_0 = arith.constant 0 : index
    %0 = vector.load %arg1[%c0, %c0_0] : memref<16x128xbf16, #tpu.memory_space<vmem>>, vector<16x128xbf16>
    %c0_1 = arith.constant 0 : index
    %c0_2 = arith.constant 0 : index
    %1 = vector.load %arg2[%c0_1, %c0_2] : memref<128x256xbf16, #tpu.memory_space<vmem>>, vector<128x256xbf16>
    %cst = arith.constant dense<0.000000e+00> : vector<16x256xf32>
    %2 = tpu.matmul %0, %1, %cst {dimension_numbers = #tpu.dot_dimension_numbers<[1], [0], [0], [1], [0, 0, 1, 1], [], []>} : vector<16x128xbf16>, vector<128x256xbf16>, vector<16x256xf32> -> vector<16x256xf32>
    %c0_3 = arith.constant 0 : index
    %c0_4 = arith.constant 0 : index
    %3 = vector.load %arg3[%c0_3, %c0_4] : memref<1x256xf32, #tpu.memory_space<vmem>>, vector<1x256xf32>
    %4 = vector.broadcast %3 : vector<1x256xf32> to vector<16x256xf32>
    %5 = arith.addf %2, %4 : vector<16x256xf32>
    %6 = arith.truncf %5 : vector<16x256xf32> to vector<16x256xbf16>
    %c0_5 = arith.constant 0 : index
    %c0_6 = arith.constant 0 : index
    %c0_7 = arith.constant 0 : index
    %7 = vector.load %arg4[%c0_5, %c0_6, %c0_7] : memref<4x256x256xbf16, #tpu.memory_space<vmem>>, vector<1x256x256xbf16>
    %8 = vector.shape_cast %7 : vector<1x256x256xbf16> to vector<256x256xbf16>
    %cst_8 = arith.constant dense<0.000000e+00> : vector<16x256xf32>
    %9 = tpu.matmul %6, %8, %cst_8 {dimension_numbers = #tpu.dot_dimension_numbers<[1], [0], [0], [1], [0, 0, 1, 1], [], []>} : vector<16x256xbf16>, vector<256x256xbf16>, vector<16x256xf32> -> vector<16x256xf32>
    %c0_9 = arith.constant 0 : index
    %c0_10 = arith.constant 0 : index
    %c0_11 = arith.constant 0 : index
    %10 = vector.load %arg5[%c0_9, %c0_10, %c0_11] : memref<4x1x256xf32, #tpu.memory_space<vmem>>, vector<1x1x256xf32>
    %11 = vector.shape_cast %10 : vector<1x1x256xf32> to vector<1x256xf32>
    %12 = vector.broadcast %11 : vector<1x256xf32> to vector<16x256xf32>
    %13 = arith.addf %9, %12 : vector<16x256xf32>
    %14 = arith.truncf %13 : vector<16x256xf32> to vector<16x256xbf16>
    %c1 = arith.constant 1 : index
    %c0_12 = arith.constant 0 : index
    %c0_13 = arith.constant 0 : index
    %15 = vector.load %arg4[%c1, %c0_12, %c0_13] : memref<4x256x256xbf16, #tpu.memory_space<vmem>>, vector<1x256x256xbf16>
    %16 = vector.shape_cast %15 : vector<1x256x256xbf16> to vector<256x256xbf16>
    %cst_14 = arith.constant dense<0.000000e+00> : vector<16x256xf32>
    %17 = tpu.matmul %14, %16, %cst_14 {dimension_numbers = #tpu.dot_dimension_numbers<[1], [0], [0], [1], [0, 0, 1, 1], [], []>} : vector<16x256xbf16>, vector<256x256xbf16>, vector<16x256xf32> -> vector<16x256xf32>
    %c1_15 = arith.constant 1 : index
    %c0_16 = arith.constant 0 : index
    %c0_17 = arith.constant 0 : index
    %18 = vector.load %arg5[%c1_15, %c0_16, %c0_17] : memref<4x1x256xf32, #tpu.memory_space<vmem>>, vector<1x1x256xf32>
    %19 = vector.shape_cast %18 : vector<1x1x256xf32> to vector<1x256xf32>
    %20 = vector.broadcast %19 : vector<1x256xf32> to vector<16x256xf32>
    %21 = arith.addf %17, %20 : vector<16x256xf32>
    %22 = arith.truncf %21 : vector<16x256xf32> to vector<16x256xbf16>
    %c2 = arith.constant 2 : index
    %c0_18 = arith.constant 0 : index
    %c0_19 = arith.constant 0 : index
    %23 = vector.load %arg4[%c2, %c0_18, %c0_19] : memref<4x256x256xbf16, #tpu.memory_space<vmem>>, vector<1x256x256xbf16>
    %24 = vector.shape_cast %23 : vector<1x256x256xbf16> to vector<256x256xbf16>
    %cst_20 = arith.constant dense<0.000000e+00> : vector<16x256xf32>
    %25 = tpu.matmul %22, %24, %cst_20 {dimension_numbers = #tpu.dot_dimension_numbers<[1], [0], [0], [1], [0, 0, 1, 1], [], []>} : vector<16x256xbf16>, vector<256x256xbf16>, vector<16x256xf32> -> vector<16x256xf32>
    %c2_21 = arith.constant 2 : index
    %c0_22 = arith.constant 0 : index
    %c0_23 = arith.constant 0 : index
    %26 = vector.load %arg5[%c2_21, %c0_22, %c0_23] : memref<4x1x256xf32, #tpu.memory_space<vmem>>, vector<1x1x256xf32>
    %27 = vector.shape_cast %26 : vector<1x1x256xf32> to vector<1x256xf32>
    %28 = vector.broadcast %27 : vector<1x256xf32> to vector<16x256xf32>
    %29 = arith.addf %25, %28 : vector<16x256xf32>
    %30 = arith.truncf %29 : vector<16x256xf32> to vector<16x256xbf16>
    %c3 = arith.constant 3 : index
    %c0_24 = arith.constant 0 : index
    %c0_25 = arith.constant 0 : index
    %31 = vector.load %arg4[%c3, %c0_24, %c0_25] : memref<4x256x256xbf16, #tpu.memory_space<vmem>>, vector<1x256x256xbf16>
    %32 = vector.shape_cast %31 : vector<1x256x256xbf16> to vector<256x256xbf16>
    %cst_26 = arith.constant dense<0.000000e+00> : vector<16x256xf32>
    %33 = tpu.matmul %30, %32, %cst_26 {dimension_numbers = #tpu.dot_dimension_numbers<[1], [0], [0], [1], [0, 0, 1, 1], [], []>} : vector<16x256xbf16>, vector<256x256xbf16>, vector<16x256xf32> -> vector<16x256xf32>
    %c3_27 = arith.constant 3 : index
    %c0_28 = arith.constant 0 : index
    %c0_29 = arith.constant 0 : index
    %34 = vector.load %arg5[%c3_27, %c0_28, %c0_29] : memref<4x1x256xf32, #tpu.memory_space<vmem>>, vector<1x1x256xf32>
    %35 = vector.shape_cast %34 : vector<1x1x256xf32> to vector<1x256xf32>
    %36 = vector.broadcast %35 : vector<1x256xf32> to vector<16x256xf32>
    %37 = arith.addf %33, %36 : vector<16x256xf32>
    %38 = arith.truncf %37 : vector<16x256xf32> to vector<16x256xbf16>
    %c0_30 = arith.constant 0 : index
    %c0_31 = arith.constant 0 : index
    %39 = vector.load %arg6[%c0_30, %c0_31] : memref<256x128xbf16, #tpu.memory_space<vmem>>, vector<256x128xbf16>
    %cst_32 = arith.constant dense<0.000000e+00> : vector<16x128xf32>
    %40 = tpu.matmul %38, %39, %cst_32 {dimension_numbers = #tpu.dot_dimension_numbers<[1], [0], [0], [1], [0, 0, 1, 1], [], []>} : vector<16x256xbf16>, vector<256x128xbf16>, vector<16x128xf32> -> vector<16x128xf32>
    %c0_33 = arith.constant 0 : index
    %c0_34 = arith.constant 0 : index
    %41 = vector.load %arg7[%c0_33, %c0_34] : memref<1x128xf32, #tpu.memory_space<vmem>>, vector<1x128xf32>
    %42 = vector.broadcast %41 : vector<1x128xf32> to vector<16x128xf32>
    %43 = arith.addf %40, %42 : vector<16x128xf32>
    %c0_35 = arith.constant 0 : index
    %c0_36 = arith.constant 0 : index
    %44 = vector.load %arg8[%c0_35, %c0_36] : memref<16x128xf32, #tpu.memory_space<vmem>>, vector<16x128xf32>
    tpu.vector_store %arg8[%c0_35, %c0_36], %43 {strides = array<i32>} : memref<16x128xf32, #tpu.memory_space<vmem>>, vector<16x128xf32>,
    return
  }
  func.func @transform_0(%arg0: i32) -> (i32, i32) {
    %c0_i32 = arith.constant 0 : i32
    %c0_i32_0 = arith.constant 0 : i32
    return %arg0, %c0_i32 : i32, i32
  }
  func.func @transform_1(%arg0: i32) -> (i32, i32) {
    %c0_i32 = arith.constant 0 : i32
    %c0_i32_0 = arith.constant 0 : i32
    %c0_i32_1 = arith.constant 0 : i32
    return %c0_i32, %c0_i32_0 : i32, i32
  }
  func.func @transform_2(%arg0: i32) -> (i32, i32) {
    %c0_i32 = arith.constant 0 : i32
    %c0_i32_0 = arith.constant 0 : i32
    %c0_i32_1 = arith.constant 0 : i32
    return %c0_i32, %c0_i32_0 : i32, i32
  }
  func.func @transform_3(%arg0: i32) -> (i32, i32, i32) {
    %c0_i32 = arith.constant 0 : i32
    %c0_i32_0 = arith.constant 0 : i32
    %c0_i32_1 = arith.constant 0 : i32
    %c0_i32_2 = arith.constant 0 : i32
    return %c0_i32, %c0_i32_0, %c0_i32_1 : i32, i32, i32
  }
  func.func @transform_4(%arg0: i32) -> (i32, i32, i32) {
    %c0_i32 = arith.constant 0 : i32
    %c0_i32_0 = arith.constant 0 : i32
    %c0_i32_1 = arith.constant 0 : i32
    %c0_i32_2 = arith.constant 0 : i32
    return %c0_i32, %c0_i32_0, %c0_i32_1 : i32, i32, i32
  }
  func.func @transform_5(%arg0: i32) -> (i32, i32) {
    %c0_i32 = arith.constant 0 : i32
    %c0_i32_0 = arith.constant 0 : i32
    %c0_i32_1 = arith.constant 0 : i32
    return %c0_i32, %c0_i32_0 : i32, i32
  }
  func.func @transform_6(%arg0: i32) -> (i32, i32) {
    %c0_i32 = arith.constant 0 : i32
    %c0_i32_0 = arith.constant 0 : i32
    %c0_i32_1 = arith.constant 0 : i32
    return %c0_i32, %c0_i32_0 : i32, i32
  }
  func.func @transform_7(%arg0: i32) -> (i32, i32) {
    %c0_i32 = arith.constant 0 : i32
    %c0_i32_0 = arith.constant 0 : i32
    return %arg0, %c0_i32 : i32, i32
  }
}

</mosaic_0001>

<bundles_post_ra>
// kernel: tpu_custom_call.1
= control target key start
LH: loop header
LB: loop body
LE: loop exit
PB: predicated region body
PF: predicated region fallthrough
CT: control target
= control target key end

     0   :  { %12 = vsyncpa [#allocation3], 0  ;;  %s2556_s0 = inlined_call_operand.hbm [shape: bf16[16,128], index: 0, kind: input, shape index: {}]   ;;  %s2557_s1 = inlined_call_operand.hbm [shape: bf16[128,256], index: 1, kind: input, shape index: {}]   ;;  %s2558_s2 = inlined_call_operand.hbm [shape: f32[1,256], index: 2, kind: input, shape index: {}]   ;;  %s2559_s3 = inlined_call_operand.hbm [shape: bf16[4,256,256], index: 3, kind: input, shape index: {}]   ;;  %s2560_s4 = inlined_call_operand.hbm [shape: f32[4,1,256], index: 4, kind: input, shape index: {}]   ;;  %s2561_s5 = inlined_call_operand.hbm [shape: bf16[256,128], index: 5, kind: input, shape index: {}]   ;;  %s2562_s6 = inlined_call_operand.vmem [shape: f32[1,128], index: 6, kind: input, shape index: {}]   ;;  %s2563_s7 = inlined_call_operand.hbm [shape: f32[16,128], index: 7, kind: output, shape index: {}]  }
   0x1   :  { %13 = vsyncpa [#allocation6], 0 }
   0x2   :  { %14 = vsyncpa [#allocation9], 0 }
   0x3   :  { %15 = vsyncpa [#allocation12], 0  ;;  %s34_s26 = sshll.u32 %s2557_s1, 4  ;;  %s35_s26 = int_to_ptr.hbm [resolvable:$true] %s34_s26 }
   0x4   :  { %16 = vsyncpa [#allocation4], 0  ;;  %s2470_s27 = smov [#allocation5]   ;;  %s58_s8 = sshll.u32 %s2559_s3, 4  ;;  %s59_s8 = int_to_ptr.hbm [resolvable:$true] %s58_s8 }
   0x5   :  { %s36_s28 = sshll.u32 %s2470_s27, 4  ;;  %s2471_s9 = smov 128   ;;  %s37_s28 = int_to_ptr.vmem [resolvable:$true] %s36_s28 }
   0x6   :  { %s2472_s10 = smov 8   ;;  %s2473_s11 = smov [#allocation8]  }
   0x7   :  { %42 = dma.hbm_to_vmem [thread:$0]  %s35_s26, 2048, %s37_s28, [#allocation6], %s2471_s9, %s2471_s9, %s2472_s10  }
   0x8   :  { %s60_s12 = sshll.u32 %s2473_s11, 4  ;;  %s21_s14 = sshll.u32 %s2556_s0, 4  ;;  %s61_s12 = int_to_ptr.vmem [resolvable:$true] %s60_s12  ;;  %s22_s14 = int_to_ptr.hbm [resolvable:$true] %s21_s14 }
   0x9   :  { %66 = dma.hbm_to_vmem [thread:$0]  %s59_s8, 16384, %s61_s12, [#allocation9], %s2471_s9, %s2471_s9, %s2472_s10  }
   0xa   :  { %s2474_s3 = smov [#allocation2]   ;;  %s48_s18 = sshll.u32 %s2558_s2, 4  ;;  %s49_s18 = int_to_ptr.hbm [resolvable:$true] %s48_s18 }
   0xb   :  { %s23_s15 = sshll.u32 %s2474_s3, 4  ;;  %s2475_s19 = smov 64   ;;  %s24_s15 = int_to_ptr.vmem [resolvable:$true] %s23_s15 }
   0xc   :  { %s2476_s20 = smov 4   ;;  %s2477_s21 = smov [#allocation7]  }
   0xd   :  { %29 = dma.hbm_to_vmem [thread:$0]  %s22_s14, 128, %s24_s15, [#allocation3], %s2475_s19, %s2475_s19, %s2476_s20  }
   0xe   :  { %s50_s22 = sshll.u32 %s2477_s21, 4  ;;  %s71_s24 = sshll.u32 %s2560_s4, 4  ;;  %s51_s22 = int_to_ptr.vmem [resolvable:$true] %s50_s22  ;;  %s72_s24 = int_to_ptr.hbm [resolvable:$true] %s71_s24 }
   0xf   :  { %53 = dma.hbm_to_vmem [thread:$0]  %s49_s18, 32, %s51_s22, [#allocation6]  }
  0x10   :  { %s2478_s25 = smov [#allocation10]   ;;  %s84_s2 = sshll.u32 %s2561_s5, 4  ;;  %s85_s2 = int_to_ptr.hbm [resolvable:$true] %s84_s2 }
  0x11   :  { %s73_s26 = sshll.u32 %s2478_s25, 4  ;;  %s2479_s29 = smov 32   ;;  %s74_s26 = int_to_ptr.vmem [resolvable:$true] %s73_s26 }
  0x12   :  { %s2480_s30 = smov 2   ;;  %s2481_s8 = smov [#allocation11]  }
  0x13   :  { %79 = dma.hbm_to_vmem [thread:$0]  %s72_s24, 128, %s74_s26, [#allocation9], %s2479_s29, %s2479_s29, %s2480_s30  }
  0x14   :  { %s86_s11 = sshll.u32 %s2481_s8, 4  ;;  %s87_s11 = int_to_ptr.vmem [resolvable:$true] %s86_s11 }
  0x15   :  { %92 = dma.hbm_to_vmem [thread:$0]  %s85_s2, 2048, %s87_s11, [#allocation12], %s2475_s19, %s2475_s19, %s2476_s20  }
  0x16   :  { %2460 = dma.done.wait [#allocation3], 128  }
  0x17   :  { %2461 = vsyncadd [#allocation3], 4294967168 }
  0x18   :  { %2462 = dma.done.wait [#allocation6], 2080  }
  0x19   :  { %2463 = vsyncadd [#allocation6], 4294965216 }
  0x1a   :  { %2464 = dma.done.wait [#allocation9], 16512  }
  0x1b   :  { %2465 = vsyncadd [#allocation9], 4294950784 }
  0x1c   :  { %2466 = dma.done.wait [#allocation12], 2048  }
  0x1d   :  { %2467 = vsyncadd [#allocation12], 4294965248  ;;  %v1535_v0 = vld [vmem:[#allocation5 + $0x70] sm:$0xf]  ;;  %v2133_v1 = vld [vmem:[#allocation5 + $0x74] sm:$0xf0] }
  0x1e   :  { %v2132_v2 = vld [vmem:[#allocation5 + $0x74] sm:$0xf]  ;;  %v1536_v3 = vor.u32 %v2133_v1, %v1535_v0  ;;  %v1537_v4 = vld [vmem:[#allocation5 + $0x78] sm:$0xf0]  ;;  %v1527_v5 = vld [vmem:[#allocation5 + $0x60] sm:$0xf] }
  0x1f   :  { %v2131_v6 = vld [vmem:[#allocation5 + $0x64] sm:$0xf0]  ;;  %v1540_v7 = vor.u32 %v2132_v2, %v1537_v4  ;;  %v2130_v8 = vld [vmem:[#allocation5 + $0x64] sm:$0xf]  ;;  %v1529_v9 = vld [vmem:[#allocation5 + $0x68] sm:$0xf0] }
  0x20   :  { %229 = vmatpush.bf16.msra.mxu0 %v1536_v3  ;;  %v1528_v10 = vor.u32 %v2131_v6, %v1527_v5  ;;  %v1532_v11 = vor.u32 %v2130_v8, %v1529_v9  ;;  %v1519_v12 = vld [vmem:[#allocation5 + $0x50] sm:$0xf]  ;;  %v2129_v13 = vld [vmem:[#allocation5 + $0x54] sm:$0xf0]  ;;  %v2128_v14 = vld [vmem:[#allocation5 + $0x54] sm:$0xf] }
  0x21   :  { %243 = vmatpush.bf16.msra.mxu1 %v1540_v7  ;;  %v1521_v15 = vld [vmem:[#allocation5 + $0x58] sm:$0xf0]  ;;  %v1520_v16 = vor.u32 %v2129_v13, %v1519_v12  ;;  %v1511_v18 = vld [vmem:[#allocation5 + $0x40] sm:$0xf]  ;;  %v2127_v19 = vld [vmem:[#allocation5 + $0x44] sm:$0xf0] }
  0x22   :  { %v1524_v17 = vor.u32 %v2128_v14, %v1521_v15  ;;  %v2126_v20 = vld [vmem:[#allocation5 + $0x44] sm:$0xf]  ;;  %v1513_v21 = vld [vmem:[#allocation5 + $0x48] sm:$0xf0]  ;;  %v1512_v22 = vor.u32 %v2127_v19, %v1511_v18  ;;  %v1599_v23 = vld [vmem:[#allocation8 + $0x70] sm:$0xf] }
  0x23   :  { %v2149_v24 = vld [vmem:[#allocation8 + $0x74] sm:$0xf0]  ;;  %v1663_v25 = vld [vmem:[#allocation8 + $0xf0] sm:$0xf]  ;;  %v1516_v26 = vor.u32 %v2126_v20, %v1513_v21  ;;  %v1591_v34 = vld [vmem:[#allocation8 + $0x60] sm:$0xf] }
  0x24   :  { %230 = vmatpush.bf16.msra.mxu0 %v1528_v10  ;;  %v1503_v27 = vld [vmem:[#allocation5 + $0x30] sm:$0xf]  ;;  %v2125_v28 = vld [vmem:[#allocation5 + $0x34] sm:$0xf0]  ;;  %v1600_v29 = vor.u32 %v2149_v24, %v1599_v23  ;;  %v2124_v31 = vld [vmem:[#allocation5 + $0x34] sm:$0xf] }
  0x25   :  { %244 = vmatpush.bf16.msra.mxu1 %v1532_v11  ;;  %v2165_v30 = vld [vmem:[#allocation8 + $0xf4] sm:$0xf0]  ;;  %v2147_v35 = vld [vmem:[#allocation8 + $0x64] sm:$0xf0]  ;;  %v1655_v36 = vld [vmem:[#allocation8 + $0xe0] sm:$0xf]  ;;  %v1504_v38 = vor.u32 %v2125_v28, %v1503_v27 }
  0x26   :  { %v1505_v32 = vld [vmem:[#allocation5 + $0x38] sm:$0xf0]  ;;  %v1664_v33 = vor.u32 %v2165_v30, %v1663_v25  ;;  %457 = vmatpush.bf16.msra.mxu2 %v1600_v29  ;;  %v2163_v37 = vld [vmem:[#allocation8 + $0xe4] sm:$0xf0]  ;;  %v1495_v39 = vld [vmem:[#allocation5 + $0x20] sm:$0xf]  ;;  %v1592_v41 = vor.u32 %v2147_v35, %v1591_v34 }
  0x27   :  { %v2123_v40 = vld [vmem:[#allocation5 + $0x24] sm:$0xf0]  ;;  %v1656_v42 = vor.u32 %v2163_v37, %v1655_v36  ;;  %v1508_v43 = vor.u32 %v2124_v31, %v1505_v32  ;;  %v2122_v44 = vld [vmem:[#allocation5 + $0x24] sm:$0xf]  ;;  %v1583_v45 = vld [vmem:[#allocation8 + $0x50] sm:$0xf] }
  0x28   :  { %231 = vmatpush.bf16.msra.mxu0 %v1520_v16  ;;  %471 = vmatpush.bf16.msra.mxu3 %v1664_v33  ;;  %v2145_v46 = vld [vmem:[#allocation8 + $0x54] sm:$0xf0]  ;;  %v1497_v47 = vld [vmem:[#allocation5 + $0x28] sm:$0xf0]  ;;  %v1647_v48 = vld [vmem:[#allocation8 + $0xd0] sm:$0xf]  ;;  %v1496_v51 = vor.u32 %v2123_v40, %v1495_v39 }
  0x29   :  { %245 = vmatpush.bf16.msra.mxu1 %v1524_v17  ;;  %v2161_v49 = vld [vmem:[#allocation8 + $0xd4] sm:$0xf0]  ;;  %v1584_v50 = vor.u32 %v2145_v46, %v1583_v45  ;;  %v1487_v52 = vld [vmem:[#allocation5 + $0x10] sm:$0xf]  ;;  %v1575_v54 = vld [vmem:[#allocation8 + $0x40] sm:$0xf]  ;;  %v1500_v56 = vor.u32 %v2122_v44, %v1497_v47 }
  0x2a   :  { %458 = vmatpush.bf16.msra.mxu2 %v1592_v41  ;;  %v1648_v53 = vor.u32 %v2161_v49, %v1647_v48  ;;  %v2143_v55 = vld [vmem:[#allocation8 + $0x44] sm:$0xf0]  ;;  %v2121_v57 = vld [vmem:[#allocation5 + $0x14] sm:$0xf0]  ;;  %v1639_v58 = vld [vmem:[#allocation8 + $0xc0] sm:$0xf] }
  0x2b   :  { %v2159_v59 = vld [vmem:[#allocation8 + $0xc4] sm:$0xf0]  ;;  %v2120_v60 = vld [vmem:[#allocation5 + $0x14] sm:$0xf]  ;;  %v1489_v61 = vld [vmem:[#allocation5 + $0x18] sm:$0xf0]  ;;  %v1576_v0 = vor.u32 %v2143_v55, %v1575_v54  ;;  %v1488_v1 = vor.u32 %v2121_v57, %v1487_v52 }
  0x2c   :  { %232 = vmatpush.bf16.msra.mxu0 %v1512_v22  ;;  %472 = vmatpush.bf16.msra.mxu3 %v1656_v42  ;;  %v1479_v62 = vld [vmem:[#allocation5] sm:$0xf]  ;;  %v2119_v63 = vld [vmem:[#allocation5 + $0x4] sm:$0xf0]  ;;  %v2118_v2 = vld [vmem:[#allocation5 + $0x4] sm:$0xf]  ;;  %v1640_v3 = vor.u32 %v2159_v59, %v1639_v58  ;;  %v1492_v6 = vor.u32 %v2120_v60, %v1489_v61 }
  0x2d   :  { %246 = vmatpush.bf16.msra.mxu1 %v1516_v26  ;;  %v1567_v4 = vld [vmem:[#allocation8 + $0x30] sm:$0xf]  ;;  %v2141_v5 = vld [vmem:[#allocation8 + $0x34] sm:$0xf0]  ;;  %v1481_v9 = vld [vmem:[#allocation5 + $0x8] sm:$0xf0]  ;;  %v1480_v15 = vor.u32 %v2119_v63, %v1479_v62 }
  0x2e   :  { %459 = vmatpush.bf16.msra.mxu2 %v1584_v50  ;;  %v1631_v7 = vld [vmem:[#allocation8 + $0xb0] sm:$0xf]  ;;  %v2157_v8 = vld [vmem:[#allocation8 + $0xb4] sm:$0xf0]  ;;  %v2148_v10 = vld [vmem:[#allocation8 + $0x74] sm:$0xf]  ;;  %v1568_v14 = vor.u32 %v2141_v5, %v1567_v4  ;;  %v1484_v17 = vor.u32 %v2118_v2, %v1481_v9 }
  0x2f   :  { %v1601_v11 = vld [vmem:[#allocation8 + $0x78] sm:$0xf0]  ;;  %v2164_v12 = vld [vmem:[#allocation8 + $0xf4] sm:$0xf]  ;;  %v1632_v16 = vor.u32 %v2157_v8, %v1631_v7  ;;  %v2146_v20 = vld [vmem:[#allocation8 + $0x64] sm:$0xf] }
  0x30   :  { %233 = vmatpush.bf16.msra.mxu0 %v1504_v38  ;;  %473 = vmatpush.bf16.msra.mxu3 %v1648_v53  ;;  %v1665_v13 = vld [vmem:[#allocation8 + $0xf8] sm:$0xf0]  ;;  %v1604_v18 = vor.u32 %v2148_v10, %v1601_v11  ;;  %v1593_v21 = vld [vmem:[#allocation8 + $0x68] sm:$0xf0]  ;;  %v2162_v23 = vld [vmem:[#allocation8 + $0xe4] sm:$0xf] }
  0x31   :  { %247 = vmatpush.bf16.msra.mxu1 %v1508_v43  ;;  %v1668_v19 = vor.u32 %v2164_v12, %v1665_v13  ;;  %v2117_v22 = vld [vmem:[#allocation2] sm:$0xff]  ;;  %v1657_v24 = vld [vmem:[#allocation8 + $0xe8] sm:$0xf0]  ;;  %v1596_v25 = vor.u32 %v2146_v20, %v1593_v21  ;;  %v2142_v33 = vld [vmem:[#allocation8 + $0x44] sm:$0xf]  ;;  %s2482_s12 = smov [#allocation13]  }
  0x32   :  { %460 = vmatpush.bf16.msra.mxu2 %v1576_v0  ;;  %v1660_v26 = vor.u32 %v2162_v23, %v1657_v24  ;;  %v2144_v27 = vld [vmem:[#allocation8 + $0x54] sm:$0xf]  ;;  %v1585_v28 = vld [vmem:[#allocation8 + $0x58] sm:$0xf0]  ;;  %v1577_v34 = vld [vmem:[#allocation8 + $0x48] sm:$0xf0] }
  0x33   :  { %v2160_v29 = vld [vmem:[#allocation8 + $0xd4] sm:$0xf]  ;;  %v1649_v30 = vld [vmem:[#allocation8 + $0xd8] sm:$0xf0]  ;;  %v1588_v31 = vor.u32 %v2144_v27, %v1585_v28  ;;  %v2158_v35 = vld [vmem:[#allocation8 + $0xc4] sm:$0xf]  ;;  %v1580_v37 = vor.u32 %v2142_v33, %v1577_v34 }
  0x34   :  { %234 = vmatpush.bf16.msra.mxu0 %v1496_v51  ;;  %474 = vmatpush.bf16.msra.mxu3 %v1640_v3  ;;  %v1652_v32 = vor.u32 %v2160_v29, %v1649_v30  ;;  %v1641_v36 = vld [vmem:[#allocation8 + $0xc8] sm:$0xf0]  ;;  %v2140_v39 = vld [vmem:[#allocation8 + $0x34] sm:$0xf]  ;;  %v1569_v40 = vld [vmem:[#allocation8 + $0x38] sm:$0xf0] }
  0x35   :  { %248 = vmatpush.bf16.msra.mxu1 %v1500_v56  ;;  %v1644_v38 = vor.u32 %v2158_v35, %v1641_v36  ;;  %v2156_v41 = vld [vmem:[#allocation8 + $0xb4] sm:$0xf]  ;;  %v1633_v42 = vld [vmem:[#allocation8 + $0xb8] sm:$0xf0]  ;;  %v1572_v43 = vor.u32 %v2140_v39, %v1569_v40  ;;  %v1559_v45 = vld [vmem:[#allocation8 + $0x20] sm:$0xf] }
  0x36   :  { %461 = vmatpush.bf16.msra.mxu2 %v1568_v14  ;;  %v1636_v44 = vor.u32 %v2156_v41, %v1633_v42  ;;  %v2139_v46 = vld [vmem:[#allocation8 + $0x24] sm:$0xf0]  ;;  %v1623_v47 = vld [vmem:[#allocation8 + $0xa0] sm:$0xf]  ;;  %v2138_v50 = vld [vmem:[#allocation8 + $0x24] sm:$0xf] }
  0x37   :  { %v1560_v48 = vor.u32 %v2139_v46, %v1559_v45  ;;  %v2155_v49 = vld [vmem:[#allocation8 + $0xa4] sm:$0xf0]  ;;  %v1561_v52 = vld [vmem:[#allocation8 + $0x28] sm:$0xf0]  ;;  %v2154_v53 = vld [vmem:[#allocation8 + $0xa4] sm:$0xf] }
  0x38   :  { %235 = vmatpush.bf16.msra.mxu0 %v1488_v1  ;;  %475 = vmatpush.bf16.msra.mxu3 %v1632_v16  ;;  %v1624_v51 = vor.u32 %v2155_v49, %v1623_v47  ;;  %v1625_v54 = vld [vmem:[#allocation8 + $0xa8] sm:$0xf0]  ;;  %v1564_v55 = vor.u32 %v2138_v50, %v1561_v52  ;;  %v1551_v57 = vld [vmem:[#allocation8 + $0x10] sm:$0xf]  ;;  %v2137_v58 = vld [vmem:[#allocation8 + $0x14] sm:$0xf0] }
  0x39   :  { %249 = vmatpush.bf16.msra.mxu1 %v1492_v6  ;;  %v1628_v56 = vor.u32 %v2154_v53, %v1625_v54  ;;  %v1615_v59 = vld [vmem:[#allocation8 + $0x90] sm:$0xf]  ;;  %v1552_v60 = vor.u32 %v2137_v58, %v1551_v57  ;;  %v2153_v61 = vld [vmem:[#allocation8 + $0x94] sm:$0xf0]  ;;  %v2136_v62 = vld [vmem:[#allocation8 + $0x14] sm:$0xf] }
  0x3a   :  { %462 = vmatpush.bf16.msra.mxu2 %v1560_v48  ;;  %v1553_v63 = vld [vmem:[#allocation8 + $0x18] sm:$0xf0]  ;;  %v1616_v0 = vor.u32 %v2153_v61, %v1615_v59  ;;  %v2152_v2 = vld [vmem:[#allocation8 + $0x94] sm:$0xf]  ;;  %v1543_v5 = vld [vmem:[#allocation8] sm:$0xf] }
  0x3b   :  { %v1556_v1 = vor.u32 %v2136_v62, %v1553_v63  ;;  %v1617_v3 = vld [vmem:[#allocation8 + $0x98] sm:$0xf0]  ;;  %v2135_v6 = vld [vmem:[#allocation8 + $0x4] sm:$0xf0]  ;;  %v1607_v7 = vld [vmem:[#allocation8 + $0x80] sm:$0xf] }
  0x3c   :  { %236 = vmatpush.bf16.msra.mxu0 %v1480_v15  ;;  %476 = vmatpush.bf16.msra.mxu3 %v1624_v51  ;;  %v1620_v4 = vor.u32 %v2152_v2, %v1617_v3  ;;  %v1544_v8 = vor.u32 %v2135_v6, %v1543_v5  ;;  %v2151_v9 = vld [vmem:[#allocation8 + $0x84] sm:$0xf0]  ;;  %v2134_v10 = vld [vmem:[#allocation8 + $0x4] sm:$0xf]  ;;  %v1545_v11 = vld [vmem:[#allocation8 + $0x8] sm:$0xf0] }
  0x3d   :  { %250 = vmatpush.bf16.msra.mxu1 %v1484_v17  ;;  %v1608_v12 = vor.u32 %v2151_v9, %v1607_v7  ;;  %v1548_v13 = vor.u32 %v2134_v10, %v1545_v11  ;;  %v2150_v14 = vld [vmem:[#allocation8 + $0x84] sm:$0xf]  ;;  %v1609_v15 = vld [vmem:[#allocation8 + $0x88] sm:$0xf0]  ;;  %v1791_v17 = vld [vmem:[#allocation8 + $0x1f0] sm:$0xf] }
  0x3e   :  { %463 = vmatpush.bf16.msra.mxu2 %v1552_v60  ;;  %v1612_v16 = vor.u32 %v2150_v14, %v1609_v15  ;;  %v1793_v21 = vld [vmem:[#allocation8 + $0x1f8] sm:$0xf0]  ;;  %v2195_v23 = vld [vmem:[#allocation8 + $0x1e4] sm:$0xf0]  ;;  %v1727_v27 = vld [vmem:[#allocation8 + $0x170] sm:$0xf] }
  0x3f   :  { %237 = vmatmul.bf16.vlgmr.msra.gmra.mxu0 %v2117_v22  ;;  %v2181_v29 = vld [vmem:[#allocation8 + $0x174] sm:$0xf0]  ;;  %v2180_v30 = vld [vmem:[#allocation8 + $0x174] sm:$0xf]  ;;  %v1775_v35 = vld [vmem:[#allocation8 + $0x1d0] sm:$0xf] }
  0x40   :  { %485 = vmatpush.bf16.msrb.mxu0 %v1604_v18  ;;  %251 = vmatmul.bf16.vlgmr.msra.gmra.mxu1 %v2117_v22  ;;  %v2197_v18 = vld [vmem:[#allocation8 + $0x1f4] sm:$0xf0]  ;;  %v1783_v22 = vld [vmem:[#allocation8 + $0x1e0] sm:$0xf]  ;;  %v1728_v33 = vor.u32 %v2181_v29, %v1727_v27  ;;  %v2179_v40 = vld [vmem:[#allocation8 + $0x164] sm:$0xf0] }
  0x41   :  { %499 = vmatpush.bf16.msrb.mxu1 %v1668_v19  ;;  %477 = vmatpush.bf16.msra.mxu3 %v1616_v0  ;;  %v2196_v19 = vld [vmem:[#allocation8 + $0x1f4] sm:$0xf]  ;;  %v1792_v20 = vor.u32 %v2197_v18, %v1791_v17  ;;  %v1784_v28 = vor.u32 %v2195_v23, %v1783_v22  ;;  %v2193_v36 = vld [vmem:[#allocation8 + $0x1d4] sm:$0xf0]  ;;  %v1719_v39 = vld [vmem:[#allocation8 + $0x160] sm:$0xf] }
  0x42   :  { %464 = vmatpush.bf16.msra.mxu2 %v1544_v8  ;;  %v1796_v24 = vor.u32 %v2196_v19, %v1793_v21  ;;  %v1720_v41 = vor.u32 %v2179_v40, %v1719_v39  ;;  %v2178_v42 = vld [vmem:[#allocation8 + $0x164] sm:$0xf]  ;;  %v1767_v46 = vld [vmem:[#allocation8 + $0x1c0] sm:$0xf]  ;;  %v2191_v47 = vld [vmem:[#allocation8 + $0x1c4] sm:$0xf0] }
  0x43   :  { %v1711_v49 = vld [vmem:[#allocation8 + $0x150] sm:$0xf]  ;;  %v2177_v50 = vld [vmem:[#allocation8 + $0x154] sm:$0xf0]  ;;  %v2176_v51 = vld [vmem:[#allocation8 + $0x154] sm:$0xf]  ;;  %v1768_v57 = vor.u32 %v2191_v47, %v1767_v46 }
  0x44   :  { %486 = vmatpush.bf16.msrb.mxu0 %v1596_v25  ;;  %v2194_v25 = vld [vmem:[#allocation8 + $0x1e4] sm:$0xf]  ;;  %v1769_v53 = vld [vmem:[#allocation8 + $0x1c8] sm:$0xf0]  ;;  %v1713_v54 = vld [vmem:[#allocation8 + $0x158] sm:$0xf0] }
  0x45   :  { %500 = vmatpush.bf16.msrb.mxu1 %v1660_v26  ;;  %478 = vmatpush.bf16.msra.mxu3 %v1608_v12  ;;  %v1785_v26 = vld [vmem:[#allocation8 + $0x1e8] sm:$0xf0]  ;;  %v2190_v52 = vld [vmem:[#allocation8 + $0x1c4] sm:$0xf]  ;;  %v137_v61 = vld [vmem:[#allocation7] sm:$0x3] }
  0x46   :  { %715 = vmatpush.bf16.msrb.mxu2 %v1728_v33  ;;  %v1772_v58 = vor.u32 %v2190_v52, %v1769_v53  ;;  %v139_v62 = vperm.slane %v137_v61, 0  ;;  %v140_v63 = vperm.slane %v137_v61, 1  ;;  %v1759_v8 = vld [vmem:[#allocation8 + $0x1b0] sm:$0xf]  ;;  %v2189_v9 = vld [vmem:[#allocation8 + $0x1b4] sm:$0xf0] }
  0x47   :  { %v2188_v10 = vld [vmem:[#allocation8 + $0x1b4] sm:$0xf]  ;;  %v1760_v11 = vor.u32 %v2189_v9, %v1759_v8  ;;  %v1761_v12 = vld [vmem:[#allocation8 + $0x1b8] sm:$0xf0]  ;;  %v1703_v14 = vld [vmem:[#allocation8 + $0x140] sm:$0xf] }
  0x48   :  { %487 = vmatpush.bf16.msrb.mxu0 %v1588_v31  ;;  %v1729_v31 = vld [vmem:[#allocation8 + $0x178] sm:$0xf0]  ;;  %v2175_v15 = vld [vmem:[#allocation8 + $0x144] sm:$0xf0]  ;;  %v1705_v18 = vld [vmem:[#allocation8 + $0x148] sm:$0xf0] }
  0x49   :  { %501 = vmatpush.bf16.msrb.mxu1 %v1652_v32  ;;  %729 = vmatpush.bf16.msrb.mxu3 %v1792_v20  ;;  %v1788_v32 = vor.u32 %v2194_v25, %v1785_v26  ;;  %v1732_v34 = vor.u32 %v2180_v30, %v1729_v31  ;;  %v1704_v17 = vor.u32 %v2175_v15, %v1703_v14  ;;  %v1751_v20 = vld [vmem:[#allocation8 + $0x1a0] sm:$0xf]  ;;  %v2187_v21 = vld [vmem:[#allocation8 + $0x1a4] sm:$0xf0]  ;;  %v2186_v22 = vld [vmem:[#allocation8 + $0x1a4] sm:$0xf] }
  0x4a   :  { %716 = vmatpush.bf16.msrb.mxu2 %v1720_v41  ;;  %v1752_v23 = vor.u32 %v2187_v21, %v1751_v20  ;;  %v1695_v26 = vld [vmem:[#allocation8 + $0x130] sm:$0xf]  ;;  %v2173_v27 = vld [vmem:[#allocation8 + $0x134] sm:$0xf0]  ;;  %v1697_v30 = vld [vmem:[#allocation8 + $0x138] sm:$0xf0] }
  0x4b   :  { %v1696_v29 = vor.u32 %v2173_v27, %v1695_v26  ;;  %v2185_v33 = vld [vmem:[#allocation8 + $0x194] sm:$0xf0]  ;;  %v2171_v39 = vld [vmem:[#allocation8 + $0x124] sm:$0xf0]  ;;  %v2170_v40 = vld [vmem:[#allocation8 + $0x124] sm:$0xf] }
  0x4c   :  { %488 = vmatpush.bf16.msrb.mxu0 %v1580_v37  ;;  %v2192_v37 = vld [vmem:[#allocation8 + $0x1d4] sm:$0xf]  ;;  %v2182_v46 = vld [vmem:[#allocation8 + $0x184] sm:$0xf]  ;;  %v1855_v8 = vld [vmem:[#allocation8 + $0x270] sm:$0xf] }
  0x4d   :  { %502 = vmatpush.bf16.msrb.mxu1 %v1644_v38  ;;  %v1777_v38 = vld [vmem:[#allocation8 + $0x1d8] sm:$0xf0]  ;;  %730 = vmatpush.bf16.msrb.mxu3 %v1784_v28  ;;  %v2172_v28 = vld [vmem:[#allocation8 + $0x134] sm:$0xf]  ;;  %s1455_s13 = sshll.u32 %s2482_s12, 4  ;;  %s1457_s3 = sshll.u32 %s2563_s7, 4  ;;  %s1456_s13 = int_to_ptr.vmem [resolvable:$true] %s1455_s13  ;;  %s1458_s3 = int_to_ptr.hbm [resolvable:$true] %s1457_s3 }
  0x4e   :  { %v1780_v48 = vor.u32 %v2192_v37, %v1777_v38  ;;  %v1700_v31 = vor.u32 %v2172_v28, %v1697_v30  ;;  %v1687_v38 = vld [vmem:[#allocation8 + $0x120] sm:$0xf]  ;;  %v2168_v52 = vld [vmem:[#allocation8 + $0x114] sm:$0xf] }
  0x4f   :  { %v1688_v41 = vor.u32 %v2171_v39, %v1687_v38 }
  0x50   :  { %489 = vmatpush.bf16.msrb.mxu0 %v1572_v43  ;;  %v1721_v43 = vld [vmem:[#allocation8 + $0x168] sm:$0xf0] }
  0x51   :  { %503 = vmatpush.bf16.msrb.mxu1 %v1636_v44  ;;  %v1776_v44 = vor.u32 %v2193_v36, %v1775_v35  ;;  %v1724_v45 = vor.u32 %v2178_v42, %v1721_v43  ;;  %v1745_v36 = vld [vmem:[#allocation8 + $0x198] sm:$0xf0]  ;;  %v1689_v42 = vld [vmem:[#allocation8 + $0x128] sm:$0xf0] }
  0x52   :  { %v1692_v43 = vor.u32 %v2170_v40, %v1689_v42 }
  0x53   :  { %731 = vmatpush.bf16.msrb.mxu3 %v1776_v44  ;;  %v1735_v44 = vld [vmem:[#allocation8 + $0x180] sm:$0xf] }
  0x54   :  { %490 = vmatpush.bf16.msrb.mxu0 %v1564_v55  ;;  %v1712_v55 = vor.u32 %v2177_v50, %v1711_v49  ;;  %v1679_v50 = vld [vmem:[#allocation8 + $0x110] sm:$0xf] }
  0x55   :  { %504 = vmatpush.bf16.msrb.mxu1 %v1628_v56  ;;  %v1716_v56 = vor.u32 %v2176_v51, %v1713_v54  ;;  %v2169_v51 = vld [vmem:[#allocation8 + $0x114] sm:$0xf0]  ;;  %v1681_v54 = vld [vmem:[#allocation8 + $0x118] sm:$0xf0] }
  0x56   :  { %717 = vmatpush.bf16.msrb.mxu2 %v1712_v55  ;;  %v1680_v53 = vor.u32 %v2169_v51, %v1679_v50  ;;  %v1684_v55 = vor.u32 %v2168_v52, %v1681_v54  ;;  %v2223_v50 = vld [vmem:[#allocation8 + $0x2c4] sm:$0xf0]  ;;  %v2222_v51 = vld [vmem:[#allocation8 + $0x2c4] sm:$0xf]  ;;  %v1839_v54 = vld [vmem:[#allocation8 + $0x250] sm:$0xf] }
  0x57   :  { %732 = vmatpush.bf16.msrb.mxu3 %v1768_v57  ;;  %v2167_v57 = vld [vmem:[#allocation8 + $0x104] sm:$0xf0] }
  0x58   :  { %491 = vmatpush.bf16.msrb.mxu0 %v1556_v1 }
  0x59   :  { %505 = vmatpush.bf16.msrb.mxu1 %v1620_v4 }
  0x5a   :  { %718 = vmatpush.bf16.msrb.mxu2 %v1704_v17  ;;  %v2225_v17 = vld [vmem:[#allocation8 + $0x2d4] sm:$0xf0] }
  0x5b   :  { %733 = vmatpush.bf16.msrb.mxu3 %v1760_v11  ;;  %v2212_v11 = vld [vmem:[#allocation8 + $0x274] sm:$0xf] }
  0x5c   :  { %492 = vmatpush.bf16.msrb.mxu0 %v1548_v13  ;;  %v1764_v13 = vor.u32 %v2188_v10, %v1761_v12  ;;  %v2213_v10 = vld [vmem:[#allocation8 + $0x274] sm:$0xf0]  ;;  %v1857_v12 = vld [vmem:[#allocation8 + $0x278] sm:$0xf0] }
  0x5d   :  { %506 = vmatpush.bf16.msrb.mxu1 %v1612_v16  ;;  %v2174_v16 = vld [vmem:[#allocation8 + $0x144] sm:$0xf]  ;;  %v1856_v14 = vor.u32 %v2213_v10, %v1855_v8  ;;  %v1860_v15 = vor.u32 %v2212_v11, %v1857_v12  ;;  %v2219_v10 = vld [vmem:[#allocation8 + $0x2a4] sm:$0xf0] }
  0x5e   :  { %v1708_v19 = vor.u32 %v2174_v16, %v1705_v18  ;;  %719 = vmatpush.bf16.msrb.mxu2 %v1696_v29  ;;  %v1903_v16 = vld [vmem:[#allocation8 + $0x2d0] sm:$0xf]  ;;  %v2224_v18 = vld [vmem:[#allocation8 + $0x2d4] sm:$0xf]  ;;  %v2218_v11 = vld [vmem:[#allocation8 + $0x2a4] sm:$0xf] }
  0x5f   :  { %734 = vmatpush.bf16.msrb.mxu3 %v1752_v23  ;;  %v1904_v20 = vor.u32 %v2225_v17, %v1903_v16  ;;  %v2205_v16 = vld [vmem:[#allocation8 + $0x234] sm:$0xf0]  ;;  %v2204_v17 = vld [vmem:[#allocation8 + $0x234] sm:$0xf] }
  0x60   :  { %743 = vmatpush.bf16.msra.mxu0 %v1732_v34  ;;  %v2184_v34 = vld [vmem:[#allocation8 + $0x194] sm:$0xf] }
  0x61   :  { %757 = vmatpush.bf16.msra.mxu1 %v1796_v24  ;;  %v1753_v24 = vld [vmem:[#allocation8 + $0x1a8] sm:$0xf0]  ;;  %v1748_v37 = vor.u32 %v2184_v34, %v1745_v36 }
  0x62   :  { %v1756_v25 = vor.u32 %v2186_v22, %v1753_v24  ;;  %720 = vmatpush.bf16.msrb.mxu2 %v1688_v41  ;;  %v291_v22 = vld [vmem:[#allocation10] sm:$0x3] }
  0x63   :  { %v293_v30 = vperm.slane %v291_v22, 0 }
  0x64   :  { %744 = vmatpush.bf16.msra.mxu0 %v1724_v45  ;;  %v2183_v45 = vld [vmem:[#allocation8 + $0x184] sm:$0xf0] }
  0x65   :  { %758 = vmatpush.bf16.msra.mxu1 %v1788_v32  ;;  %v1743_v32 = vld [vmem:[#allocation8 + $0x190] sm:$0xf]  ;;  %v1736_v47 = vor.u32 %v2183_v45, %v1735_v44  ;;  %v2211_v44 = vld [vmem:[#allocation8 + $0x264] sm:$0xf0]  ;;  %v2210_v45 = vld [vmem:[#allocation8 + $0x264] sm:$0xf] }
  0x66   :  { %v1744_v35 = vor.u32 %v2185_v33, %v1743_v32  ;;  %721 = vmatpush.bf16.msrb.mxu2 %v1680_v53  ;;  %v1897_v53 = vld [vmem:[#allocation8 + $0x2c8] sm:$0xf0] }
  0x68   :  { %745 = vmatpush.bf16.msra.mxu0 %v1716_v56  ;;  %735 = vmatpush.bf16.msrb.mxu3 %v1744_v35  ;;  %v1671_v56 = vld [vmem:[#allocation8 + $0x100] sm:$0xf] }
  0x69   :  { %759 = vmatpush.bf16.msra.mxu1 %v1780_v48  ;;  %v1737_v48 = vld [vmem:[#allocation8 + $0x188] sm:$0xf0] }
  0x6a   :  { %v1740_v49 = vor.u32 %v2182_v46, %v1737_v48 }
  0x6c   :  { %746 = vmatpush.bf16.msra.mxu0 %v1708_v19  ;;  %736 = vmatpush.bf16.msrb.mxu3 %v1736_v47  ;;  %v1905_v19 = vld [vmem:[#allocation8 + $0x2d8] sm:$0xf0]  ;;  %v1849_v47 = vld [vmem:[#allocation8 + $0x268] sm:$0xf0] }
  0x6d   :  { %760 = vmatpush.bf16.msra.mxu1 %v1772_v58  ;;  %v2166_v58 = vld [vmem:[#allocation8 + $0x104] sm:$0xf]  ;;  %v1908_v21 = vor.u32 %v2224_v18, %v1905_v19  ;;  %v1852_v48 = vor.u32 %v2210_v45, %v1849_v47  ;;  %v1825_v19 = vld [vmem:[#allocation8 + $0x238] sm:$0xf0]  ;;  %v1799_v45 = vld [vmem:[#allocation8 + $0x200] sm:$0xf] }
  0x6e   :  { %v2198_v47 = vld [vmem:[#allocation8 + $0x204] sm:$0xf] }
  0x70   :  { %747 = vmatpush.bf16.msra.mxu0 %v1700_v31 }
  0x71   :  { %761 = vmatpush.bf16.msra.mxu1 %v1764_v13 }
  0x74   :  { %748 = vmatpush.bf16.msra.mxu0 %v1692_v43  ;;  %v1847_v43 = vld [vmem:[#allocation8 + $0x260] sm:$0xf] }
  0x75   :  { %762 = vmatpush.bf16.msra.mxu1 %v1756_v25  ;;  %v294_v25 = vperm.slane %v291_v22, 1  ;;  %v1848_v46 = vor.u32 %v2211_v44, %v1847_v43  ;;  %v2217_v22 = vld [vmem:[#allocation8 + $0x294] sm:$0xf0]  ;;  %v1809_v43 = vld [vmem:[#allocation8 + $0x218] sm:$0xf0] }
  0x78   :  { %749 = vmatpush.bf16.msra.mxu0 %v1684_v55  ;;  %v2209_v55 = vld [vmem:[#allocation8 + $0x254] sm:$0xf0] }
  0x79   :  { %763 = vmatpush.bf16.msra.mxu1 %v1748_v37 }
  0x7d   :  { %764 = vmatpush.bf16.msra.mxu1 %v1740_v49  ;;  %v1895_v49 = vld [vmem:[#allocation8 + $0x2c0] sm:$0xf] }
  0x7e   :  { %v1896_v52 = vor.u32 %v2223_v50, %v1895_v49  ;;  %v1801_v49 = vld [vmem:[#allocation8 + $0x208] sm:$0xf0] }
  0x7f   :  { %v1804_v50 = vor.u32 %v2198_v47, %v1801_v49  ;;  %v2240_v47 = vld [vmem:[#allocation8 + $0x354] sm:$0xf] }
  0xbc   :  { %v238_v59 = vpop.f32.mrf.mxu0 }
  0xbd   :  { %v252_v60 = vpop.f32.mrf.mxu1  ;;  %v239_v1 = vadd.f32 %v238_v59, %v139_v62  ;;  %v1672_v59 = vor.u32 %v2167_v57, %v1671_v56  ;;  %v1900_v56 = vor.u32 %v2222_v51, %v1897_v53  ;;  %v1840_v57 = vor.u32 %v2209_v55, %v1839_v54  ;;  %v2047_v51 = vld [vmem:[#allocation8 + $0x3f0] sm:$0xf]  ;;  %v2260_v53 = vld [vmem:[#allocation8 + $0x3f4] sm:$0xf]  ;;  %v2049_v55 = vld [vmem:[#allocation8 + $0x3f8] sm:$0xf0] }
  0xbe   :  { %v253_v4 = vadd.f32 %v252_v60, %v140_v63  ;;  %v1673_v60 = vld [vmem:[#allocation8 + $0x108] sm:$0xf0] }
  0xbf   :  { %v1676_v61 = vor.u32 %v2166_v58, %v1673_v60  ;;  %722 = vmatpush.bf16.msrb.mxu2 %v1672_v59  ;;  %v2208_v58 = vld [vmem:[#allocation8 + $0x254] sm:$0xf]  ;;  %v1841_v59 = vld [vmem:[#allocation8 + $0x258] sm:$0xf0] }
  0xc0   :  { %v1844_v60 = vor.u32 %v2208_v58, %v1841_v59  ;;  %v2052_v58 = vor.u32 %v2260_v53, %v2049_v55  ;;  %v2258_v59 = vld [vmem:[#allocation8 + $0x3e4] sm:$0xf] }
  0xc1   :  { %750 = vmatpush.bf16.msra.mxu0 %v1676_v61  ;;  %v1887_v61 = vld [vmem:[#allocation8 + $0x2b0] sm:$0xf] }
  0xc4   :  { %v240_v0 = vpop.f32.mrf.mxu0 }
  0xc5   :  { %v241_v2 = vadd.f32 %v240_v0, %v139_v62  ;;  %v254_v3 = vpop.f32.mrf.mxu1  ;;  %v1919_v62 = vld [vmem:[#allocation8 + $0x2f0] sm:$0xf]  ;;  %v2228_v0 = vld [vmem:[#allocation8 + $0x2f4] sm:$0xf] }
  0xc6   :  { %v255_v5 = vadd.f32 %v254_v3, %v140_v63  ;;  %v2229_v63 = vld [vmem:[#allocation8 + $0x2f4] sm:$0xf0]  ;;  %v1911_v3 = vld [vmem:[#allocation8 + $0x2e0] sm:$0xf] }
  0xc7   :  { %v257_v6 = vpack.c.bf16 %v241_v2, %v239_v1  ;;  %v1920_v1 = vor.u32 %v2229_v63, %v1919_v62  ;;  %v1921_v2 = vld [vmem:[#allocation8 + $0x2f8] sm:$0xf0]  ;;  %v2221_v62 = vld [vmem:[#allocation8 + $0x2b4] sm:$0xf0]  ;;  %v2220_v63 = vld [vmem:[#allocation8 + $0x2b4] sm:$0xf] }
  0xc8   :  { %v258_v7 = vpack.c.bf16 %v255_v5, %v253_v4  ;;  %v2227_v4 = vld [vmem:[#allocation8 + $0x2e4] sm:$0xf0]  ;;  %v1924_v5 = vor.u32 %v2228_v0, %v1921_v2  ;;  %v1888_v0 = vor.u32 %v2221_v62, %v1887_v61  ;;  %v1983_v61 = vld [vmem:[#allocation8 + $0x370] sm:$0xf] }
  0xc9   :  { %465 = vmatmul.bf16.vlgmr.msra.gmra.mxu2 %v257_v6  ;;  %493 = vmatmul.bf16.vlgmr.msrb.gmra.mxu0 %v257_v6  ;;  %v2226_v6 = vld [vmem:[#allocation8 + $0x2e4] sm:$0xf]  ;;  %v1912_v9 = vor.u32 %v2227_v4, %v1911_v3  ;;  %v1831_v3 = vld [vmem:[#allocation8 + $0x240] sm:$0xf]  ;;  %v2207_v4 = vld [vmem:[#allocation8 + $0x244] sm:$0xf0] }
  0xca   :  { %479 = vmatmul.bf16.vlgmr.msra.gmra.mxu3 %v258_v7  ;;  %507 = vmatmul.bf16.vlgmr.msrb.gmra.mxu1 %v258_v7  ;;  %v1913_v7 = vld [vmem:[#allocation8 + $0x2e8] sm:$0xf0] }
  0xcb   :  { %987 = vmatpush.bf16.msra.mxu3 %v1920_v1  ;;  %1015 = vmatpush.bf16.msrb.mxu1 %v1924_v5  ;;  %v1916_v13 = vor.u32 %v2226_v6, %v1913_v7  ;;  %v1889_v1 = vld [vmem:[#allocation8 + $0x2b8] sm:$0xf0]  ;;  %v1832_v5 = vor.u32 %v2207_v4, %v1831_v3  ;;  %v2206_v6 = vld [vmem:[#allocation8 + $0x244] sm:$0xf]  ;;  %v1833_v7 = vld [vmem:[#allocation8 + $0x248] sm:$0xf0] }
  0xcc   :  { %973 = vmatpush.bf16.msra.mxu2 %v1856_v14  ;;  %1001 = vmatpush.bf16.msrb.mxu0 %v1860_v15  ;;  %v1892_v2 = vor.u32 %v2220_v63, %v1889_v1  ;;  %v1836_v8 = vor.u32 %v2206_v6, %v1833_v7  ;;  %v1823_v15 = vld [vmem:[#allocation8 + $0x230] sm:$0xf]  ;;  %v2245_v63 = vld [vmem:[#allocation8 + $0x374] sm:$0xf0]  ;;  %v1985_v1 = vld [vmem:[#allocation8 + $0x378] sm:$0xf0] }
  0xcd   :  { %v1824_v18 = vor.u32 %v2205_v16, %v1823_v15  ;;  %v1984_v3 = vor.u32 %v2245_v63, %v1983_v61  ;;  %v2257_v6 = vld [vmem:[#allocation8 + $0x3d4] sm:$0xf0]  ;;  %v2256_v7 = vld [vmem:[#allocation8 + $0x3d4] sm:$0xf]  ;;  %v2251_v63 = vld [vmem:[#allocation8 + $0x3a4] sm:$0xf0] }
  0xcf   :  { %988 = vmatpush.bf16.msra.mxu3 %v1912_v9  ;;  %1016 = vmatpush.bf16.msrb.mxu1 %v1916_v13  ;;  %v1879_v9 = vld [vmem:[#allocation8 + $0x2a0] sm:$0xf]  ;;  %v1881_v13 = vld [vmem:[#allocation8 + $0x2a8] sm:$0xf0] }
  0xd0   :  { %974 = vmatpush.bf16.msra.mxu2 %v1848_v46  ;;  %1002 = vmatpush.bf16.msrb.mxu0 %v1852_v48  ;;  %v1880_v12 = vor.u32 %v2219_v10, %v1879_v9  ;;  %v1884_v14 = vor.u32 %v2218_v11, %v1881_v13  ;;  %v2199_v46 = vld [vmem:[#allocation8 + $0x204] sm:$0xf0] }
  0xd1   :  { %v1800_v48 = vor.u32 %v2199_v46, %v1799_v45 }
  0xd3   :  { %989 = vmatpush.bf16.msra.mxu3 %v1904_v20  ;;  %1017 = vmatpush.bf16.msrb.mxu1 %v1908_v21  ;;  %v1828_v20 = vor.u32 %v2204_v17, %v1825_v19  ;;  %v1871_v21 = vld [vmem:[#allocation8 + $0x290] sm:$0xf] }
  0xd4   :  { %975 = vmatpush.bf16.msra.mxu2 %v1840_v57  ;;  %1003 = vmatpush.bf16.msrb.mxu0 %v1844_v60  ;;  %v2259_v57 = vld [vmem:[#allocation8 + $0x3e4] sm:$0xf0]  ;;  %v2041_v60 = vld [vmem:[#allocation8 + $0x3e8] sm:$0xf0] }
  0xd7   :  { %990 = vmatpush.bf16.msra.mxu3 %v1896_v52  ;;  %1018 = vmatpush.bf16.msrb.mxu1 %v1900_v56  ;;  %v2261_v52 = vld [vmem:[#allocation8 + $0x3f4] sm:$0xf0]  ;;  %v2039_v56 = vld [vmem:[#allocation8 + $0x3e0] sm:$0xf] }
  0xd8   :  { %976 = vmatpush.bf16.msra.mxu2 %v1832_v5  ;;  %1004 = vmatpush.bf16.msrb.mxu0 %v1836_v8  ;;  %v2048_v54 = vor.u32 %v2261_v52, %v2047_v51  ;;  %v2040_v62 = vor.u32 %v2259_v57, %v2039_v56  ;;  %v2031_v5 = vld [vmem:[#allocation8 + $0x3d0] sm:$0xf]  ;;  %v2033_v8 = vld [vmem:[#allocation8 + $0x3d8] sm:$0xf0]  ;;  %v2253_v51 = vld [vmem:[#allocation8 + $0x3b4] sm:$0xf0] }
  0xd9   :  { %v2032_v9 = vor.u32 %v2257_v6, %v2031_v5  ;;  %v2036_v10 = vor.u32 %v2256_v7, %v2033_v8  ;;  %v2252_v52 = vld [vmem:[#allocation8 + $0x3b4] sm:$0xf]  ;;  %v1959_v56 = vld [vmem:[#allocation8 + $0x340] sm:$0xf]  ;;  %v2239_v57 = vld [vmem:[#allocation8 + $0x344] sm:$0xf0] }
  0xda   :  { %v2237_v5 = vld [vmem:[#allocation8 + $0x334] sm:$0xf0]  ;;  %v2236_v6 = vld [vmem:[#allocation8 + $0x334] sm:$0xf]  ;;  %v1953_v8 = vld [vmem:[#allocation8 + $0x338] sm:$0xf0] }
  0xdb   :  { %991 = vmatpush.bf16.msra.mxu3 %v1888_v0  ;;  %1019 = vmatpush.bf16.msrb.mxu1 %v1892_v2  ;;  %v2244_v0 = vld [vmem:[#allocation8 + $0x374] sm:$0xf]  ;;  %v2044_v2 = vor.u32 %v2258_v59, %v2041_v60  ;;  %v2238_v59 = vld [vmem:[#allocation8 + $0x344] sm:$0xf]  ;;  %v1961_v60 = vld [vmem:[#allocation8 + $0x348] sm:$0xf0] }
  0xdc   :  { %977 = vmatpush.bf16.msra.mxu2 %v1824_v18  ;;  %1005 = vmatpush.bf16.msrb.mxu0 %v1828_v20  ;;  %v1988_v4 = vor.u32 %v2244_v0, %v1985_v1  ;;  %v1964_v61 = vor.u32 %v2238_v59, %v1961_v60  ;;  %v2250_v0 = vld [vmem:[#allocation8 + $0x3a4] sm:$0xf] }
  0xdf   :  { %992 = vmatpush.bf16.msra.mxu3 %v1880_v12  ;;  %1020 = vmatpush.bf16.msrb.mxu1 %v1884_v14  ;;  %v549_v12 = vld [vmem:[#allocation10 + $0x2] sm:$0x3] }
  0xe0   :  { %v552_v14 = vperm.slane %v549_v12, 1  ;;  %v551_v19 = vperm.slane %v549_v12, 0  ;;  %v2248_v12 = vld [vmem:[#allocation8 + $0x394] sm:$0xf] }
 0x146   :  { %v494_v23 = vpop.f32.mrf.mxu0 }
 0x147   :  { %v508_v24 = vpop.f32.mrf.mxu1  ;;  %v495_v27 = vadd.f32 %v494_v23, %v294_v25  ;;  %v2216_v23 = vld [vmem:[#allocation8 + $0x294] sm:$0xf] }
 0x149   :  { %v509_v33 = vadd.f32 %v508_v24, %v495_v27  ;;  %v1872_v24 = vor.u32 %v2217_v22, %v1871_v21  ;;  %v1815_v27 = vld [vmem:[#allocation8 + $0x220] sm:$0xf] }
 0x14b   :  { %993 = vmatpush.bf16.msra.mxu3 %v1872_v24 }
 0x14c   :  { %v466_v26 = vpop.f32.mrf.mxu2 }
 0x14d   :  { %v480_v28 = vpop.f32.mrf.mxu3  ;;  %v467_v35 = vadd.f32 %v466_v26, %v293_v30 }
 0x14e   :  { %v496_v29 = vpop.f32.mrf.mxu0 }
 0x14f   :  { %v497_v31 = vadd.f32 %v496_v29, %v294_v25  ;;  %v510_v32 = vpop.f32.mrf.mxu1  ;;  %v481_v40 = vadd.f32 %v480_v28, %v467_v35  ;;  %v1873_v25 = vld [vmem:[#allocation8 + $0x298] sm:$0xf0]  ;;  %v2203_v28 = vld [vmem:[#allocation8 + $0x224] sm:$0xf0]  ;;  %v2202_v29 = vld [vmem:[#allocation8 + $0x224] sm:$0xf] }
 0x150   :  { %v1876_v26 = vor.u32 %v2216_v23, %v1873_v25  ;;  %v2214_v35 = vld [vmem:[#allocation8 + $0x284] sm:$0xf] }
 0x151   :  { %v511_v34 = vadd.f32 %v510_v32, %v497_v31  ;;  %v1817_v31 = vld [vmem:[#allocation8 + $0x228] sm:$0xf0] }
 0x152   :  { %1021 = vmatpush.bf16.msrb.mxu1 %v1876_v26  ;;  %v1820_v32 = vor.u32 %v2202_v29, %v1817_v31 }
 0x153   :  { %v514_v36 = vpack.c.bf16 %v511_v34, %v509_v33  ;;  %v1863_v33 = vld [vmem:[#allocation8 + $0x280] sm:$0xf]  ;;  %v2215_v34 = vld [vmem:[#allocation8 + $0x284] sm:$0xf0] }
 0x154   :  { %v468_v37 = vpop.f32.mrf.mxu2  ;;  %1006 = vmatpush.bf16.msrb.mxu0 %v1820_v32  ;;  %v1975_v32 = vld [vmem:[#allocation8 + $0x360] sm:$0xf] }
 0x155   :  { %v469_v38 = vadd.f32 %v468_v37, %v293_v30  ;;  %737 = vmatmul.bf16.vlgmr.msrb.gmra.mxu3 %v514_v36  ;;  %765 = vmatmul.bf16.vlgmr.msra.gmra.mxu1 %v514_v36  ;;  %v482_v39 = vpop.f32.mrf.mxu3  ;;  %v1816_v30 = vor.u32 %v2203_v28, %v1815_v27  ;;  %v1864_v36 = vor.u32 %v2215_v34, %v1863_v33  ;;  %v1865_v37 = vld [vmem:[#allocation8 + $0x288] sm:$0xf0]  ;;  %v2243_v33 = vld [vmem:[#allocation8 + $0x364] sm:$0xf0]  ;;  %v2242_v34 = vld [vmem:[#allocation8 + $0x364] sm:$0xf] }
 0x157   :  { %v483_v41 = vadd.f32 %v482_v39, %v469_v38  ;;  %978 = vmatpush.bf16.msra.mxu2 %v1816_v30  ;;  %v1868_v38 = vor.u32 %v2214_v35, %v1865_v37  ;;  %v1807_v39 = vld [vmem:[#allocation8 + $0x210] sm:$0xf]  ;;  %994 = vmatpush.bf16.msra.mxu3 %v1864_v36  ;;  %v1976_v35 = vor.u32 %v2243_v33, %v1975_v32  ;;  %v1977_v36 = vld [vmem:[#allocation8 + $0x368] sm:$0xf0]  ;;  %v1937_v32 = vld [vmem:[#allocation8 + $0x318] sm:$0xf0] }
 0x158   :  { %v1980_v37 = vor.u32 %v2242_v34, %v1977_v36  ;;  %v1927_v34 = vld [vmem:[#allocation8 + $0x300] sm:$0xf]  ;;  %v2230_v36 = vld [vmem:[#allocation8 + $0x304] sm:$0xf] }
 0x159   :  { %v513_v42 = vpack.c.bf16 %v483_v41, %v481_v40  ;;  %v2201_v40 = vld [vmem:[#allocation8 + $0x214] sm:$0xf0]  ;;  %v2200_v41 = vld [vmem:[#allocation8 + $0x214] sm:$0xf]  ;;  %1022 = vmatpush.bf16.msrb.mxu1 %v1868_v38  ;;  %v2023_v38 = vld [vmem:[#allocation8 + $0x3c0] sm:$0xf] }
 0x15a   :  { %v1812_v44 = vor.u32 %v2200_v41, %v1809_v43  ;;  %v1967_v43 = vld [vmem:[#allocation8 + $0x350] sm:$0xf] }
 0x15b   :  { %723 = vmatmul.bf16.vlgmr.msrb.gmra.mxu2 %v513_v42  ;;  %751 = vmatmul.bf16.vlgmr.msra.gmra.mxu0 %v513_v42  ;;  %v1808_v42 = vor.u32 %v2201_v40, %v1807_v39  ;;  %v2255_v39 = vld [vmem:[#allocation8 + $0x3c4] sm:$0xf0]  ;;  %v2254_v40 = vld [vmem:[#allocation8 + $0x3c4] sm:$0xf] }
 0x15c   :  { %1007 = vmatpush.bf16.msrb.mxu0 %v1812_v44  ;;  %1245 = vmatpush.bf16.msrb.mxu3 %v2048_v54  ;;  %v2024_v41 = vor.u32 %v2255_v39, %v2023_v38  ;;  %v2241_v44 = vld [vmem:[#allocation8 + $0x354] sm:$0xf0]  ;;  %v2017_v54 = vld [vmem:[#allocation8 + $0x3b8] sm:$0xf0]  ;;  %v1929_v38 = vld [vmem:[#allocation8 + $0x308] sm:$0xf0] }
 0x15d   :  { %979 = vmatpush.bf16.msra.mxu2 %v1808_v42  ;;  %1273 = vmatpush.bf16.msra.mxu1 %v2052_v58  ;;  %v2025_v42 = vld [vmem:[#allocation8 + $0x3c8] sm:$0xf0]  ;;  %v1968_v46 = vor.u32 %v2241_v44, %v1967_v43  ;;  %v2020_v55 = vor.u32 %v2252_v52, %v2017_v54  ;;  %v1960_v58 = vor.u32 %v2239_v57, %v1959_v56  ;;  %v2275_v43 = vld [vmem:[#allocation11 + $0x68] sm:$0xff] }
 0x15e   :  { %v2028_v45 = vor.u32 %v2254_v40, %v2025_v42  ;;  %v1932_v39 = vor.u32 %v2230_v36, %v1929_v38  ;;  %v2277_v40 = vld [vmem:[#allocation11 + $0x78] sm:$0xff]  ;;  %v2276_v42 = vld [vmem:[#allocation11 + $0x70] sm:$0xff] }
 0x160   :  { %1008 = vmatpush.bf16.msrb.mxu0 %v1804_v50  ;;  %1246 = vmatpush.bf16.msrb.mxu3 %v2040_v62  ;;  %v2015_v50 = vld [vmem:[#allocation8 + $0x3b0] sm:$0xf]  ;;  %v2007_v62 = vld [vmem:[#allocation8 + $0x3a0] sm:$0xf] }
 0x161   :  { %980 = vmatpush.bf16.msra.mxu2 %v1800_v48  ;;  %1274 = vmatpush.bf16.msra.mxu1 %v2044_v2  ;;  %v1969_v48 = vld [vmem:[#allocation8 + $0x358] sm:$0xf0]  ;;  %v2016_v53 = vor.u32 %v2253_v51, %v2015_v50  ;;  %v2008_v1 = vor.u32 %v2251_v63, %v2007_v62  ;;  %v2009_v2 = vld [vmem:[#allocation8 + $0x3a8] sm:$0xf0] }
 0x162   :  { %v1972_v49 = vor.u32 %v2240_v47, %v1969_v48 }
 0x164   :  { %1259 = vmatpush.bf16.msra.mxu0 %v1988_v4  ;;  %1247 = vmatpush.bf16.msrb.mxu3 %v2032_v9  ;;  %v1951_v4 = vld [vmem:[#allocation8 + $0x330] sm:$0xf]  ;;  %v1956_v9 = vor.u32 %v2236_v6, %v1953_v8  ;;  %v2272_v6 = vld [vmem:[#allocation11 + $0x50] sm:$0xff] }
 0x165   :  { %1231 = vmatpush.bf16.msrb.mxu2 %v1984_v3  ;;  %1275 = vmatpush.bf16.msra.mxu1 %v2036_v10  ;;  %v2012_v3 = vor.u32 %v2250_v0, %v2009_v2  ;;  %v1952_v7 = vor.u32 %v2237_v5, %v1951_v4  ;;  %v1999_v10 = vld [vmem:[#allocation8 + $0x390] sm:$0xf]  ;;  %v2274_v2 = vld [vmem:[#allocation11 + $0x60] sm:$0xff]  ;;  %v2273_v4 = vld [vmem:[#allocation11 + $0x58] sm:$0xff] }
 0x166   :  { %v2266_v5 = vld [vmem:[#allocation11 + $0x20] sm:$0xff]  ;;  %v2271_v8 = vld [vmem:[#allocation11 + $0x48] sm:$0xff] }
 0x168   :  { %1260 = vmatpush.bf16.msra.mxu0 %v1980_v37  ;;  %1248 = vmatpush.bf16.msrb.mxu3 %v2024_v41  ;;  %v2269_v41 = vld [vmem:[#allocation11 + $0x38] sm:$0xff] }
 0x169   :  { %1232 = vmatpush.bf16.msrb.mxu2 %v1976_v35  ;;  %1276 = vmatpush.bf16.msra.mxu1 %v2028_v45  ;;  %v2231_v35 = vld [vmem:[#allocation8 + $0x304] sm:$0xf0]  ;;  %v807_v45 = vld [vmem:[#allocation10 + $0x4] sm:$0x3] }
 0x16a   :  { %v1928_v37 = vor.u32 %v2231_v35, %v1927_v34  ;;  %v810_v47 = vperm.slane %v807_v45, 1  ;;  %v809_v52 = vperm.slane %v807_v45, 0  ;;  %v2291_v34 = vld [vmem:[%s2562_s6] ss:$0 sm:$0xff] }
 0x16c   :  { %1261 = vmatpush.bf16.msra.mxu0 %v1972_v49  ;;  %1249 = vmatpush.bf16.msrb.mxu3 %v2016_v53 }
 0x16d   :  { %1233 = vmatpush.bf16.msrb.mxu2 %v1968_v46  ;;  %1277 = vmatpush.bf16.msra.mxu1 %v2020_v55 }
 0x170   :  { %1262 = vmatpush.bf16.msra.mxu0 %v1964_v61  ;;  %1250 = vmatpush.bf16.msrb.mxu3 %v2008_v1  ;;  %v2268_v1 = vld [vmem:[#allocation11 + $0x30] sm:$0xff] }
 0x171   :  { %1234 = vmatpush.bf16.msrb.mxu2 %v1960_v58  ;;  %1278 = vmatpush.bf16.msra.mxu1 %v2012_v3  ;;  %v2267_v3 = vld [vmem:[#allocation11 + $0x28] sm:$0xff] }
 0x174   :  { %1263 = vmatpush.bf16.msra.mxu0 %v1956_v9  ;;  %v2264_v9 = vld [vmem:[#allocation11 + $0x10] sm:$0xff] }
 0x175   :  { %1235 = vmatpush.bf16.msrb.mxu2 %v1952_v7  ;;  %v2265_v7 = vld [vmem:[#allocation11 + $0x18] sm:$0xff] }
 0x1d2   :  { %v766_v11 = vpop.f32.mrf.mxu1 }
 0x1d8   :  { %v752_v13 = vpop.f32.mrf.mxu0  ;;  %v738_v15 = vpop.f32.mrf.mxu3 }
 0x1d9   :  { %v753_v17 = vadd.f32 %v752_v13, %v552_v14 }
 0x1da   :  { %v768_v21 = vpop.f32.mrf.mxu1 }
 0x1db   :  { %v767_v22 = vadd.f32 %v766_v11, %v753_v17  ;;  %v2249_v11 = vld [vmem:[#allocation8 + $0x394] sm:$0xf0]  ;;  %v2235_v17 = vld [vmem:[#allocation8 + $0x324] sm:$0xf0] }
 0x1dc   :  { %v2000_v13 = vor.u32 %v2249_v11, %v1999_v10  ;;  %v2270_v10 = vld [vmem:[#allocation11 + $0x40] sm:$0xff]  ;;  %v2263_v11 = vld [vmem:[#allocation11 + $0x8] sm:$0xff] }
 0x1de   :  { %v724_v16 = vpop.f32.mrf.mxu2  ;;  %1251 = vmatpush.bf16.msrb.mxu3 %v2000_v13 }
 0x1df   :  { %v725_v24 = vadd.f32 %v724_v16, %v551_v19  ;;  %v1943_v16 = vld [vmem:[#allocation8 + $0x320] sm:$0xf] }
 0x1e0   :  { %v754_v18 = vpop.f32.mrf.mxu0  ;;  %v740_v28 = vpop.f32.mrf.mxu3 }
 0x1e1   :  { %v755_v20 = vadd.f32 %v754_v18, %v552_v14  ;;  %v739_v29 = vadd.f32 %v738_v15, %v725_v24  ;;  %v2001_v14 = vld [vmem:[#allocation8 + $0x398] sm:$0xf0]  ;;  %v2234_v18 = vld [vmem:[#allocation8 + $0x324] sm:$0xf] }
 0x1e2   :  { %v2004_v15 = vor.u32 %v2248_v12, %v2001_v14  ;;  %v2246_v24 = vld [vmem:[#allocation8 + $0x384] sm:$0xf]  ;;  %v2262_v12 = vld [vmem:[#allocation11] sm:$0xff] }
 0x1e3   :  { %v769_v23 = vadd.f32 %v768_v21, %v755_v20  ;;  %v1945_v20 = vld [vmem:[#allocation8 + $0x328] sm:$0xf0]  ;;  %v1065_v14 = vld [vmem:[#allocation10 + $0x6] sm:$0x3] }
 0x1e4   :  { %1279 = vmatpush.bf16.msra.mxu1 %v2004_v15  ;;  %v1948_v21 = vor.u32 %v2234_v18, %v1945_v20 }
 0x1e5   :  { %v772_v25 = vpack.c.bf16 %v769_v23, %v767_v22  ;;  %v1991_v22 = vld [vmem:[#allocation8 + $0x380] sm:$0xf]  ;;  %v2247_v23 = vld [vmem:[#allocation8 + $0x384] sm:$0xf0] }
 0x1e6   :  { %v726_v26 = vpop.f32.mrf.mxu2  ;;  %1264 = vmatpush.bf16.msra.mxu0 %v1948_v21  ;;  %v1067_v21 = vperm.slane %v1065_v14, 0 }
 0x1e7   :  { %v727_v27 = vadd.f32 %v726_v26, %v551_v19  ;;  %995 = vmatmul.bf16.vlgmr.msra.gmra.mxu3 %v772_v25  ;;  %1023 = vmatmul.bf16.vlgmr.msrb.gmra.mxu1 %v772_v25  ;;  %v1944_v19 = vor.u32 %v2235_v17, %v1943_v16  ;;  %v1992_v25 = vor.u32 %v2247_v23, %v1991_v22  ;;  %v1993_v26 = vld [vmem:[#allocation8 + $0x388] sm:$0xf0]  ;;  %v1068_v16 = vperm.slane %v1065_v14, 1 }
 0x1e9   :  { %v741_v30 = vadd.f32 %v740_v28, %v727_v27  ;;  %1236 = vmatpush.bf16.msrb.mxu2 %v1944_v19  ;;  %v1996_v27 = vor.u32 %v2246_v24, %v1993_v26  ;;  %v1935_v28 = vld [vmem:[#allocation8 + $0x310] sm:$0xf]  ;;  %1252 = vmatpush.bf16.msrb.mxu3 %v1992_v25 }
 0x1eb   :  { %v771_v31 = vpack.c.bf16 %v741_v30, %v739_v29  ;;  %v2233_v29 = vld [vmem:[#allocation8 + $0x314] sm:$0xf0]  ;;  %v2232_v30 = vld [vmem:[#allocation8 + $0x314] sm:$0xf]  ;;  %1280 = vmatpush.bf16.msra.mxu1 %v1996_v27 }
 0x1ec   :  { %v1940_v33 = vor.u32 %v2232_v30, %v1937_v32 }
 0x1ed   :  { %981 = vmatmul.bf16.vlgmr.msra.gmra.mxu2 %v771_v31  ;;  %1009 = vmatmul.bf16.vlgmr.msrb.gmra.mxu0 %v771_v31  ;;  %v1936_v31 = vor.u32 %v2233_v29, %v1935_v28 }
 0x1ee   :  { %1265 = vmatpush.bf16.msra.mxu0 %v1940_v33  ;;  %1435 = vmatpush.bf16.msra.mxu3 %v2277_v40 }
 0x1ef   :  { %1237 = vmatpush.bf16.msrb.mxu2 %v1936_v31 }
 0x1f2   :  { %1266 = vmatpush.bf16.msra.mxu0 %v1932_v39  ;;  %1436 = vmatpush.bf16.msra.mxu3 %v2276_v42 }
 0x1f3   :  { %1238 = vmatpush.bf16.msrb.mxu2 %v1928_v37 }
 0x1f6   :  { %1437 = vmatpush.bf16.msra.mxu3 %v2275_v43 }
 0x1f7   :  { %1421 = vmatpush.bf16.msra.mxu2 %v2269_v41 }
 0x1fa   :  { %1438 = vmatpush.bf16.msra.mxu3 %v2274_v2 }
 0x1fb   :  { %1422 = vmatpush.bf16.msra.mxu2 %v2268_v1 }
 0x1fe   :  { %1439 = vmatpush.bf16.msra.mxu3 %v2273_v4 }
 0x1ff   :  { %1423 = vmatpush.bf16.msra.mxu2 %v2267_v3 }
 0x202   :  { %1440 = vmatpush.bf16.msra.mxu3 %v2272_v6 }
 0x203   :  { %1424 = vmatpush.bf16.msra.mxu2 %v2266_v5 }
 0x206   :  { %1441 = vmatpush.bf16.msra.mxu3 %v2271_v8 }
 0x207   :  { %1425 = vmatpush.bf16.msra.mxu2 %v2265_v7 }
 0x20a   :  { %1442 = vmatpush.bf16.msra.mxu3 %v2270_v10 }
 0x20b   :  { %1426 = vmatpush.bf16.msra.mxu2 %v2264_v9 }
 0x20f   :  { %1427 = vmatpush.bf16.msra.mxu2 %v2263_v11 }
 0x213   :  { %1428 = vmatpush.bf16.msra.mxu2 %v2262_v12 }
 0x264   :  { %v1024_v44 = vpop.f32.mrf.mxu1 }
 0x26a   :  { %v1010_v46 = vpop.f32.mrf.mxu0  ;;  %v996_v48 = vpop.f32.mrf.mxu3 }
 0x26b   :  { %v1011_v50 = vadd.f32 %v1010_v46, %v810_v47 }
 0x26c   :  { %v1026_v54 = vpop.f32.mrf.mxu1 }
 0x26d   :  { %v1025_v55 = vadd.f32 %v1024_v44, %v1011_v50 }
 0x270   :  { %v982_v49 = vpop.f32.mrf.mxu2 }
 0x271   :  { %v983_v57 = vadd.f32 %v982_v49, %v809_v52 }
 0x272   :  { %v1012_v51 = vpop.f32.mrf.mxu0  ;;  %v998_v61 = vpop.f32.mrf.mxu3 }
 0x273   :  { %v1013_v53 = vadd.f32 %v1012_v51, %v810_v47  ;;  %v997_v62 = vadd.f32 %v996_v48, %v983_v57 }
 0x275   :  { %v1027_v56 = vadd.f32 %v1026_v54, %v1013_v53 }
 0x277   :  { %v1030_v58 = vpack.c.bf16 %v1027_v56, %v1025_v55 }
 0x278   :  { %v984_v59 = vpop.f32.mrf.mxu2 }
 0x279   :  { %v985_v60 = vadd.f32 %v984_v59, %v809_v52  ;;  %1253 = vmatmul.bf16.vlgmr.msrb.gmra.mxu3 %v1030_v58  ;;  %1281 = vmatmul.bf16.vlgmr.msra.gmra.mxu1 %v1030_v58 }
 0x27b   :  { %v999_v63 = vadd.f32 %v998_v61, %v985_v60 }
 0x27d   :  { %v1029_v0 = vpack.c.bf16 %v999_v63, %v997_v62 }
 0x27f   :  { %1239 = vmatmul.bf16.vlgmr.msrb.gmra.mxu2 %v1029_v0  ;;  %1267 = vmatmul.bf16.vlgmr.msra.gmra.mxu0 %v1029_v0 }
 0x2f6   :  { %v1282_v13 = vpop.f32.mrf.mxu1 }
 0x2fc   :  { %v1268_v15 = vpop.f32.mrf.mxu0  ;;  %v1254_v17 = vpop.f32.mrf.mxu3 }
 0x2fd   :  { %v1269_v19 = vadd.f32 %v1268_v15, %v1068_v16 }
 0x2fe   :  { %v1284_v23 = vpop.f32.mrf.mxu1 }
 0x2ff   :  { %v1283_v24 = vadd.f32 %v1282_v13, %v1269_v19 }
 0x302   :  { %v1240_v18 = vpop.f32.mrf.mxu2 }
 0x303   :  { %v1241_v26 = vadd.f32 %v1240_v18, %v1067_v21 }
 0x304   :  { %v1270_v20 = vpop.f32.mrf.mxu0  ;;  %v1256_v30 = vpop.f32.mrf.mxu3 }
 0x305   :  { %v1271_v22 = vadd.f32 %v1270_v20, %v1068_v16  ;;  %v1255_v31 = vadd.f32 %v1254_v17, %v1241_v26 }
 0x307   :  { %v1285_v25 = vadd.f32 %v1284_v23, %v1271_v22 }
 0x309   :  { %v1288_v27 = vpack.c.bf16 %v1285_v25, %v1283_v24 }
 0x30a   :  { %v1242_v28 = vpop.f32.mrf.mxu2 }
 0x30b   :  { %v1243_v29 = vadd.f32 %v1242_v28, %v1067_v21  ;;  %1443 = vmatmul.bf16.vlgmr.msra.gmra.mxu3 %v1288_v27 }
 0x30d   :  { %v1257_v32 = vadd.f32 %v1256_v30, %v1243_v29 }
 0x30f   :  { %v1287_v33 = vpack.c.bf16 %v1257_v32, %v1255_v31 }
 0x311   :  { %1429 = vmatmul.bf16.vlgmr.msra.gmra.mxu2 %v1287_v33 }
 0x38e   :  { %v1444_v35 = vpop.f32.mrf.mxu3 }
 0x394   :  { %v1430_v36 = vpop.f32.mrf.mxu2 }
 0x395   :  { %v1431_v37 = vadd.f32 %v2291_v34, %v1430_v36 }
 0x396   :  { %v1446_v41 = vpop.f32.mrf.mxu3 }
 0x397   :  { %v1445_v38 = vadd.f32 %v1444_v35, %v1431_v37 }
 0x399   :  { %1449 = vst [vmem:[#allocation13] sm:$0xff] %v1445_v38 }
 0x39c   :  { %v1432_v39 = vpop.f32.mrf.mxu2 }
 0x39d   :  { %v1433_v40 = vadd.f32 %v2291_v34, %v1432_v39 }
 0x39f   :  { %v1447_v42 = vadd.f32 %v1446_v41, %v1433_v40 }
 0x3a1   :  { %1450 = vst [vmem:[#allocation13 + $0x8] sm:$0xff] %v1447_v42 }
 0x3a2   :  { %1463 = dma.vmem_to_hbm [thread:$0]  %s1456_s13, 256, %s1458_s3, [#allocation4], %s2471_s9, %s2471_s9, %s2472_s10  }
 0x3a3   :  { %2468 = dma.done.wait [#allocation4], 256  }
 0x3a4   :  { %2469 = vsyncadd [#allocation4], 4294967040 }
 0x3a5   :  { %1468 = vsyncpa [#allocation3], 1 }
 0x3a6   :  { %1469 = vsyncpa [#allocation6], 1 }
 0x3a7   :  { %1470 = vsyncpa [#allocation9], 1 }
 0x3a8   :  { %1471 = vsyncpa [#allocation12], 1 }
 0x3a9   :  { %1472 = vsyncpa [#allocation4], 1 }

</bundles_post_ra>
